<compile_context>
chip_gen: v6e
topology: v6e:2x2x1
jax: 0.10.0
libtpu: 0.0.40
codegen_flags: <defaults>
</compile_context>

<pallas_src>
import jax
import jax.numpy as jnp
from jax.experimental import pallas as pl
from jax.experimental.pallas import tpu as pltpu

_LANE = 128


def _cdiv(a: int, b: int) -> int:
    return -(-a // b)


def _round_up(x: int, m: int) -> int:
    return ((x + m - 1) // m) * m


def _infer_num_tensorcores() -> int:
    """Best-effort TensorCores-per-JAX-device count (megacore parts expose 2)."""
    try:
        kind = jax.devices()[0].device_kind.lower()
    except Exception:
        return 1
    return 2 if any(tag in kind for tag in ("7", "v4", "v5p")) else 1


def _pick_batch_tile(batch: int, max_tile: int, num_cores: int):
    """Pick (tile, num_tiles): 1 step on single-TC chips when B fits, otherwise the
    smallest balanced multiple of num_cores steps (avoids padding e.g. 520 -> 1024)."""
    batch = max(int(batch), 1)
    max_tile = _round_up(max(int(max_tile), 8), 8)
    num_cores = max(int(num_cores), 1)
    steps = _cdiv(batch, max_tile)
    steps = _cdiv(steps, num_cores) * num_cores
    tb = min(_round_up(_cdiv(batch, steps), 8), max_tile)
    return tb, steps


def _make_mlp_kernel(num_hidden_layers: int, activation: str, mxu_dtype):
    """Kernel computing trunk (Linear+act)*N then the Linear(H,1) head.

    Ref order: x, (w_i, b_i) * N, w_head_row, b_head, out
      x_ref       : (TB, obs_dim)       VMEM tile, pipelined over the batch grid
      w_i         : (in_p, out_pad)     VMEM, resident (constant block index)
      b_i         : (1, out_pad) f32    VMEM, resident
      w_head_row  : (1, H_pad) f32      VMEM, resident (head weight, pre-transposed)
      b_head      : (1,) f32            SMEM scalar
      out_ref     : (TB, 1) f32         natural layout of the lane reduction
    """

    def kernel(*refs):
        x_ref = refs[0]
        out_ref = refs[-1]
        h = x_ref[...]
        idx = 1
        for _ in range(num_hidden_layers):
            w_ref, b_ref = refs[idx], refs[idx + 1]
            idx += 2
            # MXU matmul; operands optionally bf16, accumulation always f32.
            h = jnp.dot(h.astype(mxu_dtype), w_ref[...],
                        preferred_element_type=jnp.float32) + b_ref[...]
            if activation == "tanh":
                h = jnp.tanh(h)
            elif activation == "relu":
                h = jnp.maximum(h, 0.0)
            elif activation == "none":
                pass
            else:
                raise NotImplementedError(f"Unrecognized activation: {activation}")
        w_head_ref, b_head_ref = refs[idx], refs[idx + 1]
        # Head Linear(H, 1): VPU multiply + lane (XLU) reduction; keepdims gives the
        # (TB, 1) result in its natural layout -> store directly, no relayout.
        v = jnp.sum(h * w_head_ref[...], axis=-1, keepdims=True) + b_head_ref[0]
        out_ref[...] = v

    return kernel


def prepare_params(trunk_params, head_params, mxu_dtype=jnp.bfloat16):
    """One-time (per model) parameter preparation.

    trunk_params: list of (W[in, out], b[.., out]); head_params: (W[H, 1], b[1, 1]).
    Pads feature dims to multiples of 128 (exact: zero lanes stay zero through
    tanh/relu and contribute nothing downstream), keeps the first layer's input dim
    unpadded to match the unpadded x, and casts trunk weights to `mxu_dtype`.
    Run once at init so the forward path has no per-call padding XLA ops.
    """
    prepared_trunk = []
    first = True
    for w, b in trunk_params:
        w = jnp.asarray(w, jnp.float32)
        b = jnp.asarray(b, jnp.float32).reshape(1, -1)
        in_dim, out_dim = w.shape
        in_pad = in_dim if first else _round_up(in_dim, _LANE)
        out_pad = _round_up(out_dim, _LANE)
        w_p = (jnp.zeros((in_pad, out_pad), jnp.float32)
               .at[:in_dim, :out_dim].set(w).astype(mxu_dtype))
        b_p = jnp.zeros((1, out_pad), jnp.float32).at[:, :out_dim].set(b)
        prepared_trunk.append((w_p, b_p))
        first = False

    w_head, b_head = head_params
    w_head = jnp.asarray(w_head, jnp.float32).reshape(-1)          # (H,)
    h_dim = w_head.shape[0]
    h_pad = _round_up(h_dim, _LANE)
    w_head_row = jnp.zeros((1, h_pad), jnp.float32).at[0, :h_dim].set(w_head)
    b_head_s = jnp.asarray(b_head, jnp.float32).reshape((1,))
    return prepared_trunk, (w_head_row, b_head_s)


def vpg_value_mlp_forward(x, prepared_trunk, prepared_head, activation="tanh",
                          batch_tile=1024, num_tensorcores=None):
    """x: [B, obs_dim] f32; prepared_* from prepare_params(). Returns [B, 1] f32."""
    x = jnp.asarray(x, jnp.float32)
    B, obs_dim = x.shape
    num_hidden = len(prepared_trunk)
    assert num_hidden >= 1
    assert prepared_trunk[0][0].shape[0] == obs_dim, "obs_dim mismatch with params"

    if num_tensorcores is None:
        num_tensorcores = _infer_num_tensorcores()

    # Batch tiling: 1 step on single-TC chips when it fits, balanced steps on megacore.
    tb, num_tiles = _pick_batch_tile(B, batch_tile, num_tensorcores)
    b_pad = tb * num_tiles
    if b_pad != B:
        x = jnp.pad(x, ((0, b_pad - B), (0, 0)))   # batch-only pad (feature dim untouched)

    mxu_dtype = prepared_trunk[0][0].dtype

    args = [x]
    # x: last block dim == full array dim (obs_dim) -> legal and unpadded (no 32x DMA).
    in_specs = [pl.BlockSpec((tb, obs_dim), lambda i: (i, 0))]

    for w_p, b_p in prepared_trunk:
        args.extend([w_p, b_p])
        # Constant block index -> weights/biases stay VMEM-resident across grid steps.
        in_specs.append(pl.BlockSpec(w_p.shape, lambda i: (0, 0)))
        in_specs.append(pl.BlockSpec(b_p.shape, lambda i: (0, 0)))

    w_head_row, b_head_s = prepared_head
    args.extend([w_head_row, b_head_s])
    in_specs.append(pl.BlockSpec(w_head_row.shape, lambda i: (0, 0)))
    in_specs.append(pl.BlockSpec(memory_space=pltpu.MemorySpace.SMEM))

    out_spec = pl.BlockSpec((tb, 1), lambda i: (i, 0))

    kernel = _make_mlp_kernel(num_hidden, activation, mxu_dtype)

    out = pl.pallas_call(
        kernel,
        out_shape=jax.ShapeDtypeStruct((b_pad, 1), jnp.float32),
        grid=(num_tiles,),
        in_specs=in_specs,
        out_specs=out_spec,
        compiler_params=pltpu.CompilerParams(
            dimension_semantics=("parallel",),   # batch axis shards across TCs (v7x)
            # Explicit limit (v5e default scoped VMEM is only 16 MiB). Current usage
            # (resident params + double-buffered x/out + per-layer activations) is
            # well under 32 MiB for these shapes on every generation incl. v7x.
            vmem_limit_bytes=32 * 1024 * 1024,
        ),
    )(*args)

    return out[:B]


# ----------------------------------------------------------------------------- helpers
def _init_linear(key, fan_in, fan_out):
    """Deterministic init mimicking torch.nn.Linear (uniform +/- 1/sqrt(fan_in))."""
    kw, kb = jax.random.split(key)
    bound = 1.0 / jnp.sqrt(jnp.float32(fan_in))
    w = jax.random.uniform(kw, (fan_in, fan_out), jnp.float32, -bound, bound)
    b = jax.random.uniform(kb, (1, fan_out), jnp.float32, -bound, bound)
    return w, b


def _reference_forward(x, trunk_params, head_params, activation="tanh",
                       mxu_dtype=jnp.float32):
    h = jnp.asarray(x, jnp.float32)
    for w, b in trunk_params:
        h = jnp.dot(h.astype(mxu_dtype), jnp.asarray(w, mxu_dtype),
                    preferred_element_type=jnp.float32) + jnp.asarray(b, jnp.float32)
        if activation == "tanh":
            h = jnp.tanh(h)
        elif activation == "relu":
            h = jnp.maximum(h, 0.0)
    w, b = head_params
    return h @ jnp.asarray(w, jnp.float32) + jnp.asarray(b, jnp.float32)


if __name__ == "__main__":
    # Shapes consistent with the module: Box observation obs_dim=4, num_layers=2,
    # layer_size=32, activation='tanh', batch=8.
    B, OBS_DIM, NUM_LAYERS, LAYER_SIZE = 8, 4, 2, 32
    ACTIVATION = "tanh"

    key = jax.random.PRNGKey(0)
    kx, *lkeys = jax.random.split(key, 2 + NUM_LAYERS)
    x = jax.random.normal(kx, (B, OBS_DIM), jnp.float32)

    trunk_params = []
    prev = OBS_DIM
    for i in range(NUM_LAYERS):
        trunk_params.append(_init_linear(lkeys[i], prev, LAYER_SIZE))
        prev = LAYER_SIZE
    head_params = _init_linear(lkeys[-1], LAYER_SIZE, 1)

    # --- f32 MXU path: bit-accurate vs. the f32 reference. -----------------------
    pf32 = prepare_params(trunk_params, head_params, mxu_dtype=jnp.float32)
    out = jax.block_until_ready(vpg_value_mlp_forward(x, *pf32, ACTIVATION))
    ref = _reference_forward(x, trunk_params, head_params, ACTIVATION)
    assert out.shape == (B, 1) and out.dtype == jnp.float32
    assert jnp.allclose(out, ref, atol=1e-5, rtol=1e-5)

    # --- bf16 MXU path (v6e/v7x-oriented): compare to a bf16-matched reference. --
    pbf16 = prepare_params(trunk_params, head_params, mxu_dtype=jnp.bfloat16)
    out_bf = jax.block_until_ready(vpg_value_mlp_forward(x, *pbf16, ACTIVATION))
    ref_bf = _reference_forward(x, trunk_params, head_params, ACTIVATION,
                                mxu_dtype=jnp.bfloat16)
    assert out_bf.shape == (B, 1) and out_bf.dtype == jnp.float32
    assert jnp.allclose(out_bf, ref_bf, atol=1e-3, rtol=1e-3)

    # --- Larger, non-aligned batch: multi-tile / balanced-split paths. -----------
    B2 = 1000
    x2 = jax.random.normal(jax.random.PRNGKey(1), (B2, OBS_DIM), jnp.float32)
    ref2 = _reference_forward(x2, trunk_params, head_params, ACTIVATION)

    out2 = jax.block_until_ready(vpg_value_mlp_forward(x2, *pf32, ACTIVATION))
    assert out2.shape == (B2, 1) and out2.dtype == jnp.float32
    assert jnp.allclose(out2, ref2, atol=1e-5, rtol=1e-5)

    # Explicit 2-tile balanced split (v7x-style grid; serial-but-correct elsewhere).
    out3 = jax.block_until_ready(
        vpg_value_mlp_forward(x2, *pf32, ACTIVATION, num_tensorcores=2))
    assert jnp.allclose(out3, ref2, atol=1e-5, rtol=1e-5)

    print("KERNEL_OK")
</pallas_src>

<mosaic_0001>
module attributes {stable_mosaic.version = 11 : i64} {
  func.func @kernel(%arg0: i32, %arg1: memref<8x4xf32, #tpu.memory_space<vmem>>, %arg2: memref<4x128xf32, #tpu.memory_space<vmem>>, %arg3: memref<1x128xf32, #tpu.memory_space<vmem>>, %arg4: memref<128x128xf32, #tpu.memory_space<vmem>>, %arg5: memref<1x128xf32, #tpu.memory_space<vmem>>, %arg6: memref<1x128xf32, #tpu.memory_space<vmem>>, %arg7: memref<1xf32, #tpu.memory_space<smem>>, %arg8: memref<8x1xf32, #tpu.memory_space<vmem>>) attributes {dimension_semantics = [#tpu.dimension_semantics<parallel>], iteration_bounds = array<i64: 1>, scalar_prefetch = 0 : i64, scratch_operands = 0 : i64, tpu.core_type = #tpu.core_type<tc>, window_params = [{transform_indices = @transform_0, window_bounds = array<i64: 8, 4>}, {pipeline_mode = #tpu.pipeline_mode<synchronous>, transform_indices = @transform_1, window_bounds = array<i64: 4, 128>}, {pipeline_mode = #tpu.pipeline_mode<synchronous>, transform_indices = @transform_2, window_bounds = array<i64: 1, 128>}, {pipeline_mode = #tpu.pipeline_mode<synchronous>, transform_indices = @transform_3, window_bounds = array<i64: 128, 128>}, {pipeline_mode = #tpu.pipeline_mode<synchronous>, transform_indices = @transform_4, window_bounds = array<i64: 1, 128>}, {pipeline_mode = #tpu.pipeline_mode<synchronous>, transform_indices = @transform_5, window_bounds = array<i64: 1, 128>}, {transform_indices = @transform_6, window_bounds = array<i64: 1>}, {transform_indices = @transform_7, window_bounds = array<i64: 8, 1>}]} {
    %c0 = arith.constant 0 : index
    %c0_0 = arith.constant 0 : index
    %0 = vector.load %arg1[%c0, %c0_0] : memref<8x4xf32, #tpu.memory_space<vmem>>, vector<8x4xf32>
    %c0_1 = arith.constant 0 : index
    %c0_2 = arith.constant 0 : index
    %1 = vector.load %arg2[%c0_1, %c0_2] : memref<4x128xf32, #tpu.memory_space<vmem>>, vector<4x128xf32>
    %cst = arith.constant dense<0.000000e+00> : vector<8x128xf32>
    %2 = tpu.matmul %0, %1, %cst {dimension_numbers = #tpu.dot_dimension_numbers<[1], [0], [0], [1], [0, 0, 1, 1], [], []>} : vector<8x4xf32>, vector<4x128xf32>, vector<8x128xf32> -> vector<8x128xf32>
    %c0_3 = arith.constant 0 : index
    %c0_4 = arith.constant 0 : index
    %3 = vector.load %arg3[%c0_3, %c0_4] : memref<1x128xf32, #tpu.memory_space<vmem>>, vector<1x128xf32>
    %4 = vector.broadcast %3 : vector<1x128xf32> to vector<8x128xf32>
    %5 = arith.addf %2, %4 : vector<8x128xf32>
    %6 = math.tanh %5 : vector<8x128xf32>
    %c0_5 = arith.constant 0 : index
    %c0_6 = arith.constant 0 : index
    %7 = vector.load %arg4[%c0_5, %c0_6] : memref<128x128xf32, #tpu.memory_space<vmem>>, vector<128x128xf32>
    %cst_7 = arith.constant dense<0.000000e+00> : vector<8x128xf32>
    %8 = tpu.matmul %6, %7, %cst_7 {dimension_numbers = #tpu.dot_dimension_numbers<[1], [0], [0], [1], [0, 0, 1, 1], [], []>} : vector<8x128xf32>, vector<128x128xf32>, vector<8x128xf32> -> vector<8x128xf32>
    %c0_8 = arith.constant 0 : index
    %c0_9 = arith.constant 0 : index
    %9 = vector.load %arg5[%c0_8, %c0_9] : memref<1x128xf32, #tpu.memory_space<vmem>>, vector<1x128xf32>
    %10 = vector.broadcast %9 : vector<1x128xf32> to vector<8x128xf32>
    %11 = arith.addf %8, %10 : vector<8x128xf32>
    %12 = math.tanh %11 : vector<8x128xf32>
    %c0_10 = arith.constant 0 : index
    %c0_11 = arith.constant 0 : index
    %13 = vector.load %arg6[%c0_10, %c0_11] : memref<1x128xf32, #tpu.memory_space<vmem>>, vector<1x128xf32>
    %14 = vector.broadcast %13 : vector<1x128xf32> to vector<8x128xf32>
    %15 = arith.mulf %12, %14 : vector<8x128xf32>
    %cst_12 = arith.constant dense<0.000000e+00> : vector<8xf32>
    %16 = vector.multi_reduction <add>, %15, %cst_12 [1] : vector<8x128xf32> to vector<8xf32>
    %17 = vector.shape_cast %16 : vector<8xf32> to vector<8x1xf32>
    %c0_13 = arith.constant 0 : index
    %18 = memref.load %arg7[%c0_13] : memref<1xf32, #tpu.memory_space<smem>>
    %19 = vector.broadcast %18 : f32 to vector<8x1xf32>
    %20 = arith.addf %17, %19 : vector<8x1xf32>
    %c0_14 = arith.constant 0 : index
    %c0_15 = arith.constant 0 : index
    %21 = vector.load %arg8[%c0_14, %c0_15] : memref<8x1xf32, #tpu.memory_space<vmem>>, vector<8x1xf32>
    tpu.vector_store %arg8[%c0_14, %c0_15], %20 {strides = array<i32>} : memref<8x1xf32, #tpu.memory_space<vmem>>, vector<8x1xf32>,
    return
  }
  func.func @transform_0(%arg0: i32) -> (i32, i32) {
    %c0_i32 = arith.constant 0 : i32
    %c0_i32_0 = arith.constant 0 : i32
    return %arg0, %c0_i32 : i32, i32
  }
  func.func @transform_1(%arg0: i32) -> (i32, i32) {
    %c0_i32 = arith.constant 0 : i32
    %c0_i32_0 = arith.constant 0 : i32
    %c0_i32_1 = arith.constant 0 : i32
    return %c0_i32, %c0_i32_0 : i32, i32
  }
  func.func @transform_2(%arg0: i32) -> (i32, i32) {
    %c0_i32 = arith.constant 0 : i32
    %c0_i32_0 = arith.constant 0 : i32
    %c0_i32_1 = arith.constant 0 : i32
    return %c0_i32, %c0_i32_0 : i32, i32
  }
  func.func @transform_3(%arg0: i32) -> (i32, i32) {
    %c0_i32 = arith.constant 0 : i32
    %c0_i32_0 = arith.constant 0 : i32
    %c0_i32_1 = arith.constant 0 : i32
    return %c0_i32, %c0_i32_0 : i32, i32
  }
  func.func @transform_4(%arg0: i32) -> (i32, i32) {
    %c0_i32 = arith.constant 0 : i32
    %c0_i32_0 = arith.constant 0 : i32
    %c0_i32_1 = arith.constant 0 : i32
    return %c0_i32, %c0_i32_0 : i32, i32
  }
  func.func @transform_5(%arg0: i32) -> (i32, i32) {
    %c0_i32 = arith.constant 0 : i32
    %c0_i32_0 = arith.constant 0 : i32
    %c0_i32_1 = arith.constant 0 : i32
    return %c0_i32, %c0_i32_0 : i32, i32
  }
  func.func @transform_6(%arg0: i32) -> i32 {
    %c0_i32 = arith.constant 0 : i32
    %c0_i32_0 = arith.constant 0 : i32
    return %c0_i32 : i32
  }
  func.func @transform_7(%arg0: i32) -> (i32, i32) {
    %c0_i32 = arith.constant 0 : i32
    %c0_i32_0 = arith.constant 0 : i32
    return %arg0, %c0_i32 : i32, i32
  }
}

</mosaic_0001>

<bundles_post_ra>
// kernel: tpu_custom_call.1
= control target key start
LH: loop header
LB: loop body
LE: loop exit
PB: predicated region body
PF: predicated region fallthrough
CT: control target
= control target key end

     0   :  { %13 = vsyncpa [#allocation4], 0  ;;  %s338_s24 = smov [#allocation3]   ;;  %s407_s0 = inlined_call_operand.vmem [shape: f32[8,4], index: 0, kind: input, shape index: {}]   ;;  %s408_s1 = inlined_call_operand.vmem [shape: f32[4,128], index: 1, kind: input, shape index: {}]   ;;  %s409_s2 = inlined_call_operand.vmem [shape: f32[1,128], index: 2, kind: input, shape index: {}]   ;;  %s410_s3 = inlined_call_operand.hbm [shape: f32[128,128], index: 3, kind: input, shape index: {}]   ;;  %s411_s4 = inlined_call_operand.vmem [shape: f32[1,128], index: 4, kind: input, shape index: {}]   ;;  %s412_s5 = inlined_call_operand.vmem [shape: f32[1,128], index: 5, kind: input, shape index: {}]   ;;  %s413_s6 = inlined_call_operand.<no memory space> [shape: f32[1], index: 6, kind: input, shape index: {}]   ;;  %s414_s7 = inlined_call_operand.vmem [shape: f32[8,1], index: 7, kind: output, shape index: {}]  }
   0x1   :  { %s25_s25 = sshll.u32 %s338_s24, 4  ;;  %s26_s25 = int_to_ptr.vmem [resolvable:$true] %s25_s25 }
   0x2   :  { %s324_s26 = scalar_lea.vmem %s26_s25, 2048  ;;  %p329_p1 = scmp.lt.s32.totalorder %s26_s25, %s26_s25 }
   0x3   :  { %p325_p0 = scmp.ne.s32.totalorder %s26_s25, %s324_s26  ;;  %p330_p2 = scmp.lt.s32.totalorder %s324_s26, %s324_s26 }
   0x5   :  { %p331_p3 = por %p330_p2, %p329_p1 }
   0x7   :  { %p332_p4 = pnand %p331_p3, %p325_p0 }
   0x9   :  { %335 = shalt.err (!%p332_p4)
}
   0xa   :  { %s339_s27 = smov 128   ;;  %s340_s28 = smov 8  }
   0xb   :  { %31 = dma.hbm_to_vmem [thread:$0]  %s410_s3, 2048, %s26_s25, [#allocation4], %s339_s27, %s339_s27, %s340_s28  }
   0xc   :  { %336 = dma.done.wait [#allocation4], 2048  }
   0xd   :  { %337 = vsyncadd [#allocation4], 4294965248  ;;  %v341_v0 = vmov 0.0   ;;  %vm342_vm0 = vmmov 0   ;;  %vm54_vm1 = vcmask 1043456   ;;  %vm50_vm2 = vcmask 31744  }
   0xe   :  { %267 = vmatprep.subr.mxu0 %v341_v0  ;;  %269 = vmatprep.mubr.msk.f32.mxu0 %vm342_vm0, %v341_v0  ;;  %v42_v1 = vld [vmem:[%s408_s1] sm:$0xf]  ;;  %v144_v3 = vld [vmem:[#allocation3 + $0x78] sm:$0xff]  ;;  %v143_v4 = vld [vmem:[#allocation3 + $0x70] sm:$0xff]  ;;  %v234_v31 = vstv %s413_s6  ;;  %vm236_vm3 = vcmask 7168  }
   0xf   :  { %272 = vmatprep.subr.mxu1 %v341_v0  ;;  %304 = vmatprep.mubr.msk.f32.mxu1 %vm342_vm0, %v341_v0  ;;  %v41_v2 = vld [vmem:[%s407_s0] sm:$0xff]  ;;  %v142_v5 = vld [vmem:[#allocation3 + $0x68] sm:$0xff]  ;;  %v140_v7 = vld [vmem:[#allocation3 + $0x58] sm:$0xff] }
  0x10   :  { %268 = vmatpush3.msk.msra.mxu0 %vm54_vm1, %v42_v1  ;;  %273 = vmatpush3.msra.mxu1 %v144_v3  ;;  %v141_v6 = vld [vmem:[#allocation3 + $0x60] sm:$0xff]  ;;  %v139_v8 = vld [vmem:[#allocation3 + $0x50] sm:$0xff]  ;;  %v138_v9 = vld [vmem:[#allocation3 + $0x48] sm:$0xff] }
  0x11   :  { %270 = vmatmul.mubr.msk.f32.vlgmr.msra.gmra.mxu0 %vm50_vm2, %v41_v2  ;;  %274 = vmatprep.subr.mxu1 %v341_v0  ;;  %v137_v10 = vld [vmem:[#allocation3 + $0x40] sm:$0xff]  ;;  %v136_v11 = vld [vmem:[#allocation3 + $0x38] sm:$0xff]  ;;  %v135_v12 = vld [vmem:[#allocation3 + $0x30] sm:$0xff] }
  0x12   :  { %275 = vmatpush3.msra.mxu1 %v143_v4  ;;  %v134_v13 = vld [vmem:[#allocation3 + $0x28] sm:$0xff]  ;;  %v133_v14 = vld [vmem:[#allocation3 + $0x20] sm:$0xff]  ;;  %v132_v15 = vld [vmem:[#allocation3 + $0x18] sm:$0xff] }
  0x13   :  { %276 = vmatprep.subr.mxu1 %v341_v0  ;;  %v131_v16 = vld [vmem:[#allocation3 + $0x10] sm:$0xff]  ;;  %v130_v17 = vld [vmem:[#allocation3 + $0x8] sm:$0xff]  ;;  %v129_v18 = vld [vmem:[#allocation3] sm:$0xff] }
  0x14   :  { %277 = vmatpush3.msra.mxu1 %v142_v5  ;;  %v243_v19 = vld [vmem:[%s409_s2] ss:$0 sm:$0xff] }
  0x15   :  { %278 = vmatprep.subr.mxu1 %v341_v0  ;;  %v246_v24 = vld [vmem:[%s411_s4] ss:$0 sm:$0xff] }
  0x16   :  { %279 = vmatpush3.msra.mxu1 %v141_v6  ;;  %v247_v28 = vld [vmem:[%s412_s5] ss:$0 sm:$0xff] }
  0x17   :  { %280 = vmatprep.subr.mxu1 %v341_v0 }
  0x18   :  { %281 = vmatpush3.msra.mxu1 %v140_v7 }
  0x19   :  { %282 = vmatprep.subr.mxu1 %v341_v0 }
  0x1a   :  { %283 = vmatpush3.msra.mxu1 %v139_v8 }
  0x1b   :  { %284 = vmatprep.subr.mxu1 %v341_v0 }
  0x1c   :  { %285 = vmatpush3.msra.mxu1 %v138_v9 }
  0x1d   :  { %286 = vmatprep.subr.mxu1 %v341_v0 }
  0x1e   :  { %287 = vmatpush3.msra.mxu1 %v137_v10 }
  0x1f   :  { %288 = vmatprep.subr.mxu1 %v341_v0 }
  0x20   :  { %289 = vmatpush3.msra.mxu1 %v136_v11 }
  0x21   :  { %290 = vmatprep.subr.mxu1 %v341_v0 }
  0x22   :  { %291 = vmatpush3.msra.mxu1 %v135_v12 }
  0x23   :  { %292 = vmatprep.subr.mxu1 %v341_v0 }
  0x24   :  { %293 = vmatpush3.msra.mxu1 %v134_v13 }
  0x25   :  { %294 = vmatprep.subr.mxu1 %v341_v0 }
  0x26   :  { %295 = vmatpush3.msra.mxu1 %v133_v14 }
  0x27   :  { %296 = vmatprep.subr.mxu1 %v341_v0 }
  0x28   :  { %297 = vmatpush3.msra.mxu1 %v132_v15 }
  0x29   :  { %298 = vmatprep.subr.mxu1 %v341_v0 }
  0x2a   :  { %299 = vmatpush3.msra.mxu1 %v131_v16 }
  0x2b   :  { %300 = vmatprep.subr.mxu1 %v341_v0 }
  0x2c   :  { %301 = vmatpush3.msra.mxu1 %v130_v17 }
  0x2d   :  { %302 = vmatprep.subr.mxu1 %v341_v0 }
  0x2e   :  { %303 = vmatpush3.msra.mxu1 %v129_v18 }
  0xd1   :  { %v124_v20 = vpop.f32.mrf.mxu0 }
  0xd2   :  { %v125_v21 = vadd.f32 %v243_v19, %v124_v20 }
  0xd3   :  { %v271_v22 = vpop.f32.mrf.mxu0 }
  0xd4   :  { %312 = vtanh.f32 %v125_v21 }
  0xe1   :  { %v313_v23 = vpop.eup %312 }
  0xe2   :  { %305 = vmatmul.mubr.f32.vlgmr.msra.gmra.mxu1 %v313_v23 }
 0x1a2   :  { %v218_v25 = vpop.f32.mrf.mxu1 }
 0x1a3   :  { %v219_v26 = vadd.f32 %v246_v24, %v218_v25 }
 0x1a4   :  { %v306_v27 = vpop.f32.mrf.mxu1 }
 0x1a5   :  { %314 = vtanh.f32 %v219_v26 }
 0x1b2   :  { %v315_v29 = vpop.eup %314 }
 0x1b3   :  { %v230_v30 = vmul.f32 %v315_v29, %v247_v28 }
 0x1b5   :  { %231 = vadd.xlane.f32.xlu0 %v230_v30 }
 0x23e   :  { %v232_v32 = vpop.xlane.xlu0 %231 }
 0x23f   :  { %v235_v33 = vadd.f32 %v234_v31, %v232_v32 }
 0x241   :  { %237 = vst.msk [vmem:[%s414_s7] sm:$0xff] %vm236_vm3, %v235_v33 }
 0x242   :  { %242 = vsyncpa [#allocation4], 1 }

</bundles_post_ra>
